<compile_context>
chip_gen: v7x
topology: tpu7x:2x2x1
jax: 0.10.0
libtpu: 0.0.40
codegen_flags: <defaults>
</compile_context>

<pallas_src>
import math

import jax
import jax.numpy as jnp
from jax.experimental import pallas as pl
from jax.experimental.pallas import tpu as pltpu


def _round_up(x, m):
    return ((x + m - 1) // m) * m


# ------------------------------ Pallas kernel ------------------------------ #

def _deepnet_fused_kernel(x_ref, w0_ref, w_ref, shift_ref, fw_ref, fb_ref, o_ref):
    """Whole DeepNet forward for one batch tile, entirely in VMEM.

    Transposed layout: batch lives on the lane (last) dimension.

    x_ref:     (IN_PAD, TB)      bf16  x^T tile (true feature dim, rounded to 16)
    w0_ref:    (PAD, IN_PAD)     bf16  first Linear, (out, in) layout, BN folded
    w_ref:     (L, PAD, PAD)     bf16  hidden Linears, (out, in) layout, BN folded
    shift_ref: (L+1, PAD, 1)     f32   folded bias/BN shift per output feature
    fw_ref:    (PAD, 1)          f32   final Linear(hidden, 1) weight column
    fb_ref:    (1,)              f32   final bias scalar (SMEM)
    o_ref:     (1, TB)           f32   lane-dense output row for this tile
    """
    # Layer 0: contract over the true input dim only (K = IN_PAD).
    h = jnp.dot(w0_ref[...], x_ref[...], preferred_element_type=jnp.float32)
    h = jnp.maximum(h + shift_ref[0], 0.0)

    num_hidden = w_ref.shape[0]          # static Python int -> unrolled
    for l in range(num_hidden):
        y = jnp.dot(w_ref[l], h.astype(jnp.bfloat16),
                    preferred_element_type=jnp.float32)
        h = jnp.maximum(y + shift_ref[l + 1], 0.0)

    # Final Linear(hidden, 1) as a VPU multiply + sublane reduce -> (1, TB)
    # lane-dense row (no degenerate MXU matmul, no broadcast output slab).
    out = jnp.sum(h * fw_ref[...], axis=0, keepdims=True) + fb_ref[0]
    o_ref[...] = out.astype(o_ref.dtype)


# --------------------------- Parameter construction ------------------------ #

def _kaiming_uniform(key, fan_out, fan_in):
    # kaiming_uniform_(mode='fan_in', nonlinearity='relu'): bound = sqrt(6/fan_in)
    bound = math.sqrt(6.0 / fan_in)
    # PyTorch weight layout (out, in) -- used directly in the transposed kernel.
    return jax.random.uniform(key, (fan_out, fan_in), jnp.float32, -bound, bound)


def _linear_bias(key, fan_in, fan_out):
    bound = 1.0 / math.sqrt(fan_in)
    return jax.random.uniform(key, (fan_out,), jnp.float32, -bound, bound)


def init_deepnet_params(key, input_dim, num_layers, hidden_dim, *, lane_pad=128):
    assert num_layers >= 1
    eps = 1e-5
    bn_scale = 1.0 / math.sqrt(1.0 + eps)   # gamma=1, var=1, mean=0, beta=0

    raw = {"blocks": []}
    dims = [(input_dim, hidden_dim)] + [(hidden_dim, hidden_dim)] * num_layers
    for d_in, d_out in dims:
        key, kw, kb = jax.random.split(key, 3)
        w = _kaiming_uniform(kw, d_out, d_in)          # (out, in)
        b = _linear_bias(kb, d_in, d_out)              # (out,)
        raw["blocks"].append({
            "w": w * bn_scale,                          # fold BN scale into rows
            "shift": b * bn_scale,                      # (b - mean)*scale + beta
        })
    key, kw, kb = jax.random.split(key, 3)
    raw["final_w"] = _kaiming_uniform(kw, 1, hidden_dim)   # (1, hidden)
    raw["final_b"] = _linear_bias(kb, hidden_dim, 1)        # (1,)

    # ---- pack into lane/sublane-aligned bf16 stacks -------------------------
    pad = _round_up(hidden_dim, lane_pad)        # hidden/feature dim -> 128-multiple
    in_dim_pad = _round_up(input_dim, 16)        # bf16 sublane packing only

    w0 = (jnp.zeros((pad, in_dim_pad), jnp.float32)
          .at[:hidden_dim, :input_dim].set(raw["blocks"][0]["w"])
          .astype(jnp.bfloat16))
    w_stack = jnp.zeros((num_layers, pad, pad), jnp.float32)
    shift_stack = jnp.zeros((num_layers + 1, pad, 1), jnp.float32)
    shift_stack = shift_stack.at[0, :hidden_dim, 0].set(raw["blocks"][0]["shift"])
    for l in range(num_layers):
        blk = raw["blocks"][l + 1]
        w_stack = w_stack.at[l, :hidden_dim, :hidden_dim].set(blk["w"])
        shift_stack = shift_stack.at[l + 1, :hidden_dim, 0].set(blk["shift"])
    w_stack = w_stack.astype(jnp.bfloat16)

    fw = jnp.zeros((pad, 1), jnp.float32).at[:hidden_dim, 0].set(raw["final_w"][0])
    fb = raw["final_b"].astype(jnp.float32)      # (1,)

    return {
        "raw": raw,
        "packed": {"w0": w0, "w": w_stack, "shift": shift_stack, "fw": fw, "fb": fb},
        "dims": {"input_dim": input_dim, "hidden_dim": hidden_dim,
                 "pad": pad, "in_dim_pad": in_dim_pad},
    }


# --------------------------------- Forward --------------------------------- #

def deepnet_forward(params, x, *, tile_b=512):
    packed = params["packed"]
    w0, w, shift, fw, fb = (packed["w0"], packed["w"], packed["shift"],
                            packed["fw"], packed["fb"])
    n_hidden, pad, _ = w.shape
    in_dim_pad = w0.shape[1]

    batch, in_dim = x.shape
    # Batch lives on lanes -> pad to a multiple of 128 (lane-dense stores).
    b_pad = _round_up(batch, 128)
    tb = min(tile_b, b_pad)
    # v7x: make sure the "parallel" axis has >= 2 steps when the batch allows.
    if b_pad > 128 and b_pad // tb < 2:
        tb = max(128, _round_up(b_pad // 2, 128))
    b_pad = _round_up(b_pad, tb)
    grid = (b_pad // tb,)

    # Transposed input, true feature dim (rounded to 16 only), bf16 stream.
    x_t = (jnp.zeros((in_dim_pad, b_pad), jnp.bfloat16)
           .at[:in_dim, :batch].set(x.T.astype(jnp.bfloat16)))

    flops = 2 * b_pad * (pad * in_dim_pad + n_hidden * pad * pad) + 3 * b_pad * pad
    bytes_accessed = (x_t.size * 2 + w0.size * 2 + w.size * 2
                      + shift.size * 4 + fw.size * 4 + fb.size * 4 + b_pad * 4)

    # VMEM budget: resident weights (double-buffered by default), io tiles,
    # plus activation working set; clamp into a portable range (v7x = 64 MiB).
    weight_bytes = w0.size * 2 + w.size * 2 + shift.size * 4 + fw.size * 4
    io_bytes = 2 * (in_dim_pad * tb * 2 + tb * 4)
    act_bytes = 4 * pad * tb * 4
    est = 2 * weight_bytes + io_bytes + act_bytes + (4 << 20)
    vmem_limit = int(min(max(est, 16 << 20), 48 << 20))

    out = pl.pallas_call(
        _deepnet_fused_kernel,
        out_shape=jax.ShapeDtypeStruct((1, b_pad), jnp.float32),
        grid=grid,
        in_specs=[
            pl.BlockSpec((in_dim_pad, tb), lambda i: (0, i)),          # x^T tile
            pl.BlockSpec((pad, in_dim_pad), lambda i: (0, 0)),         # layer-0 W
            pl.BlockSpec((n_hidden, pad, pad), lambda i: (0, 0, 0)),   # hidden Ws
            pl.BlockSpec((n_hidden + 1, pad, 1), lambda i: (0, 0, 0)),  # shifts
            pl.BlockSpec((pad, 1), lambda i: (0, 0)),                  # head weight
            pl.BlockSpec(memory_space=pltpu.MemorySpace.SMEM),         # head bias
        ],
        out_specs=pl.BlockSpec((1, tb), lambda i: (0, i)),
        compiler_params=pltpu.CompilerParams(
            dimension_semantics=("parallel",),
            vmem_limit_bytes=vmem_limit),
        cost_estimate=pl.CostEstimate(
            flops=flops, transcendentals=0, bytes_accessed=bytes_accessed),
    )(x_t, w0, w, shift, fw, fb)

    # Lane-dense (1, b_pad) row -> (B, 1) result.
    return out[0, :batch].reshape(batch, 1)


def deepnet_reference(params, x):
    """Plain-JAX mixed-precision mirror of the kernel (bf16 matmuls, f32 acc)."""
    raw = params["raw"]
    h = x.astype(jnp.float32)
    for blk in raw["blocks"]:
        wb = blk["w"].astype(jnp.bfloat16)                       # (out, in)
        y = jnp.dot(h.astype(jnp.bfloat16), wb.T,
                    preferred_element_type=jnp.float32)
        h = jnp.maximum(y + blk["shift"][None, :], 0.0)
    return jnp.dot(h, raw["final_w"].T) + raw["final_b"][None, :]


# ----------------------------------- Main ----------------------------------- #

if __name__ == "__main__":
    batch = 8
    input_dim = 16
    hidden_dim = 32
    num_layers = 2

    key = jax.random.PRNGKey(0)
    key, kx, kp = jax.random.split(key, 3)
    x = jax.random.normal(kx, (batch, input_dim), jnp.float32)
    params = init_deepnet_params(kp, input_dim, num_layers, hidden_dim)

    out = deepnet_forward(params, x)
    out = jax.block_until_ready(out)

    ref = deepnet_reference(params, x)
    assert out.shape == (batch, 1)
    assert jnp.allclose(out, ref, atol=1e-3, rtol=1e-3)

    print("KERNEL_OK")
</pallas_src>

<mosaic_0001>
module attributes {stable_mosaic.version = 11 : i64} {
  func.func @_deepnet_fused_kernel(%arg0: i32, %arg1: memref<16x128xbf16, #tpu.memory_space<vmem>>, %arg2: memref<128x16xbf16, #tpu.memory_space<vmem>>, %arg3: memref<2x128x128xbf16, #tpu.memory_space<vmem>>, %arg4: memref<3x128x1xf32, #tpu.memory_space<vmem>>, %arg5: memref<128x1xf32, #tpu.memory_space<vmem>>, %arg6: memref<1xf32, #tpu.memory_space<smem>>, %arg7: memref<1x128xf32, #tpu.memory_space<vmem>>) attributes {dimension_semantics = [#tpu.dimension_semantics<parallel>], iteration_bounds = array<i64: 1>, scalar_prefetch = 0 : i64, scratch_operands = 0 : i64, tpu.core_type = #tpu.core_type<tc>, window_params = [{transform_indices = @transform_0, window_bounds = array<i64: 16, 128>}, {pipeline_mode = #tpu.pipeline_mode<synchronous>, transform_indices = @transform_1, window_bounds = array<i64: 128, 16>}, {pipeline_mode = #tpu.pipeline_mode<synchronous>, transform_indices = @transform_2, window_bounds = array<i64: 2, 128, 128>}, {pipeline_mode = #tpu.pipeline_mode<synchronous>, transform_indices = @transform_3, window_bounds = array<i64: 3, 128, 1>}, {pipeline_mode = #tpu.pipeline_mode<synchronous>, transform_indices = @transform_4, window_bounds = array<i64: 128, 1>}, {transform_indices = @transform_5, window_bounds = array<i64: 1>}, {transform_indices = @transform_6, window_bounds = array<i64: 1, 128>}]} {
    %c0 = arith.constant 0 : index
    %c0_0 = arith.constant 0 : index
    %0 = vector.load %arg2[%c0, %c0_0] : memref<128x16xbf16, #tpu.memory_space<vmem>>, vector<128x16xbf16>
    %c0_1 = arith.constant 0 : index
    %c0_2 = arith.constant 0 : index
    %1 = vector.load %arg1[%c0_1, %c0_2] : memref<16x128xbf16, #tpu.memory_space<vmem>>, vector<16x128xbf16>
    %cst = arith.constant dense<0.000000e+00> : vector<128x128xf32>
    %2 = tpu.matmul %0, %1, %cst {dimension_numbers = #tpu.dot_dimension_numbers<[1], [0], [0], [1], [0, 0, 1, 1], [], []>} : vector<128x16xbf16>, vector<16x128xbf16>, vector<128x128xf32> -> vector<128x128xf32>
    %c0_3 = arith.constant 0 : index
    %c0_4 = arith.constant 0 : index
    %c0_5 = arith.constant 0 : index
    %3 = vector.load %arg4[%c0_3, %c0_4, %c0_5] : memref<3x128x1xf32, #tpu.memory_space<vmem>>, vector<1x128x1xf32>
    %4 = vector.shape_cast %3 : vector<1x128x1xf32> to vector<128x1xf32>
    %5 = vector.broadcast %4 : vector<128x1xf32> to vector<128x128xf32>
    %6 = arith.addf %2, %5 : vector<128x128xf32>
    %cst_6 = arith.constant 0.000000e+00 : f32
    %7 = vector.broadcast %cst_6 : f32 to vector<128x128xf32>
    %8 = arith.maximumf %6, %7 : vector<128x128xf32>
    %c0_7 = arith.constant 0 : index
    %c0_8 = arith.constant 0 : index
    %c0_9 = arith.constant 0 : index
    %9 = vector.load %arg3[%c0_7, %c0_8, %c0_9] : memref<2x128x128xbf16, #tpu.memory_space<vmem>>, vector<1x128x128xbf16>
    %10 = vector.shape_cast %9 : vector<1x128x128xbf16> to vector<128x128xbf16>
    %11 = arith.truncf %8 : vector<128x128xf32> to vector<128x128xbf16>
    %cst_10 = arith.constant dense<0.000000e+00> : vector<128x128xf32>
    %12 = tpu.matmul %10, %11, %cst_10 {dimension_numbers = #tpu.dot_dimension_numbers<[1], [0], [0], [1], [0, 0, 1, 1], [], []>} : vector<128x128xbf16>, vector<128x128xbf16>, vector<128x128xf32> -> vector<128x128xf32>
    %c1 = arith.constant 1 : index
    %c0_11 = arith.constant 0 : index
    %c0_12 = arith.constant 0 : index
    %13 = vector.load %arg4[%c1, %c0_11, %c0_12] : memref<3x128x1xf32, #tpu.memory_space<vmem>>, vector<1x128x1xf32>
    %14 = vector.shape_cast %13 : vector<1x128x1xf32> to vector<128x1xf32>
    %15 = vector.broadcast %14 : vector<128x1xf32> to vector<128x128xf32>
    %16 = arith.addf %12, %15 : vector<128x128xf32>
    %cst_13 = arith.constant 0.000000e+00 : f32
    %17 = vector.broadcast %cst_13 : f32 to vector<128x128xf32>
    %18 = arith.maximumf %16, %17 : vector<128x128xf32>
    %c1_14 = arith.constant 1 : index
    %c0_15 = arith.constant 0 : index
    %c0_16 = arith.constant 0 : index
    %19 = vector.load %arg3[%c1_14, %c0_15, %c0_16] : memref<2x128x128xbf16, #tpu.memory_space<vmem>>, vector<1x128x128xbf16>
    %20 = vector.shape_cast %19 : vector<1x128x128xbf16> to vector<128x128xbf16>
    %21 = arith.truncf %18 : vector<128x128xf32> to vector<128x128xbf16>
    %cst_17 = arith.constant dense<0.000000e+00> : vector<128x128xf32>
    %22 = tpu.matmul %20, %21, %cst_17 {dimension_numbers = #tpu.dot_dimension_numbers<[1], [0], [0], [1], [0, 0, 1, 1], [], []>} : vector<128x128xbf16>, vector<128x128xbf16>, vector<128x128xf32> -> vector<128x128xf32>
    %c2 = arith.constant 2 : index
    %c0_18 = arith.constant 0 : index
    %c0_19 = arith.constant 0 : index
    %23 = vector.load %arg4[%c2, %c0_18, %c0_19] : memref<3x128x1xf32, #tpu.memory_space<vmem>>, vector<1x128x1xf32>
    %24 = vector.shape_cast %23 : vector<1x128x1xf32> to vector<128x1xf32>
    %25 = vector.broadcast %24 : vector<128x1xf32> to vector<128x128xf32>
    %26 = arith.addf %22, %25 : vector<128x128xf32>
    %cst_20 = arith.constant 0.000000e+00 : f32
    %27 = vector.broadcast %cst_20 : f32 to vector<128x128xf32>
    %28 = arith.maximumf %26, %27 : vector<128x128xf32>
    %c0_21 = arith.constant 0 : index
    %c0_22 = arith.constant 0 : index
    %29 = vector.load %arg5[%c0_21, %c0_22] : memref<128x1xf32, #tpu.memory_space<vmem>>, vector<128x1xf32>
    %30 = vector.broadcast %29 : vector<128x1xf32> to vector<128x128xf32>
    %31 = arith.mulf %28, %30 : vector<128x128xf32>
    %cst_23 = arith.constant dense<0.000000e+00> : vector<128xf32>
    %32 = vector.multi_reduction <add>, %31, %cst_23 [0] : vector<128x128xf32> to vector<128xf32>
    %33 = vector.shape_cast %32 : vector<128xf32> to vector<1x128xf32>
    %c0_24 = arith.constant 0 : index
    %34 = memref.load %arg6[%c0_24] : memref<1xf32, #tpu.memory_space<smem>>
    %35 = vector.broadcast %34 : f32 to vector<1x128xf32>
    %36 = arith.addf %33, %35 : vector<1x128xf32>
    %c0_25 = arith.constant 0 : index
    %c0_26 = arith.constant 0 : index
    %37 = vector.load %arg7[%c0_25, %c0_26] : memref<1x128xf32, #tpu.memory_space<vmem>>, vector<1x128xf32>
    tpu.vector_store %arg7[%c0_25, %c0_26], %36 {strides = array<i32>} : memref<1x128xf32, #tpu.memory_space<vmem>>, vector<1x128xf32>,
    return
  }
  func.func @transform_0(%arg0: i32) -> (i32, i32) {
    %c0_i32 = arith.constant 0 : i32
    %c0_i32_0 = arith.constant 0 : i32
    return %c0_i32, %arg0 : i32, i32
  }
  func.func @transform_1(%arg0: i32) -> (i32, i32) {
    %c0_i32 = arith.constant 0 : i32
    %c0_i32_0 = arith.constant 0 : i32
    %c0_i32_1 = arith.constant 0 : i32
    return %c0_i32, %c0_i32_0 : i32, i32
  }
  func.func @transform_2(%arg0: i32) -> (i32, i32, i32) {
    %c0_i32 = arith.constant 0 : i32
    %c0_i32_0 = arith.constant 0 : i32
    %c0_i32_1 = arith.constant 0 : i32
    %c0_i32_2 = arith.constant 0 : i32
    return %c0_i32, %c0_i32_0, %c0_i32_1 : i32, i32, i32
  }
  func.func @transform_3(%arg0: i32) -> (i32, i32, i32) {
    %c0_i32 = arith.constant 0 : i32
    %c0_i32_0 = arith.constant 0 : i32
    %c0_i32_1 = arith.constant 0 : i32
    %c0_i32_2 = arith.constant 0 : i32
    return %c0_i32, %c0_i32_0, %c0_i32_1 : i32, i32, i32
  }
  func.func @transform_4(%arg0: i32) -> (i32, i32) {
    %c0_i32 = arith.constant 0 : i32
    %c0_i32_0 = arith.constant 0 : i32
    %c0_i32_1 = arith.constant 0 : i32
    return %c0_i32, %c0_i32_0 : i32, i32
  }
  func.func @transform_5(%arg0: i32) -> i32 {
    %c0_i32 = arith.constant 0 : i32
    %c0_i32_0 = arith.constant 0 : i32
    return %c0_i32 : i32
  }
  func.func @transform_6(%arg0: i32) -> (i32, i32) {
    %c0_i32 = arith.constant 0 : i32
    %c0_i32_0 = arith.constant 0 : i32
    return %c0_i32, %arg0 : i32, i32
  }
}

</mosaic_0001>

<bundles_post_ra>
// kernel: tpu_custom_call.1
= control target key start
LH: loop header
LB: loop body
LE: loop exit
PB: predicated region body
PF: predicated region fallthrough
CT: control target
= control target key end

     0   :  { %v1297_v2 = vmov 0   ;;  %vm186_vm0 = vcmask 130048   ;;  %s1624_s0 = inlined_call_operand.vmem [shape: bf16[16,128], index: 0, kind: input, shape index: {}]   ;;  %s1625_s1 = inlined_call_operand.vmem [shape: bf16[128,16], index: 1, kind: input, shape index: {}]   ;;  %s1626_s2 = inlined_call_operand.vmem [shape: bf16[2,128,128], index: 2, kind: input, shape index: {}]   ;;  %s1627_s3 = inlined_call_operand.vmem [shape: f32[3,128,1], index: 3, kind: input, shape index: {}]   ;;  %s1628_s4 = inlined_call_operand.vmem [shape: f32[128,1], index: 4, kind: input, shape index: {}]   ;;  %s1629_s5 = inlined_call_operand.<no memory space> [shape: f32[1], index: 5, kind: input, shape index: {}]   ;;  %s1630_s6 = inlined_call_operand.hbm [shape: f32[1,128], index: 6, kind: output, shape index: {}]  }
   0x1   :  { %v46_v0 = vld [vmem:[%s1627_s3 + $0x10] sm:$0xff]  ;;  %v44_v1 = vld [vmem:[%s1627_s3] sm:$0xff]  ;;  %1247 = vset.pattern.permute.xlu1 %v1297_v2  ;;  %1246 = vset.pattern.permute.xlu0 %v1297_v2  ;;  %v47_v4 = vld [vmem:[%s1627_s3 + $0x18] sm:$0xff] }
   0x2   :  { %v1248_v3 = vld [vmem:[%s1624_s0] sm:$0xff]   ;;  %72 = vperm.xlu1 %1247, %v46_v0   ;;  %62 = vperm.xlu0 %1246, %v44_v1   ;;  %v45_v5 = vld [vmem:[%s1627_s3 + $0x8] sm:$0xff]  ;;  %v1251_v8 = vld [vmem:[%s1625_s1 + $0x10] sm:$0xff]  }
   0x3   :  { %1162 = vmatprep.subr.bf16.mxu0 %v1248_v3  ;;  %v1249_v6 = vld [vmem:[%s1625_s1] sm:$0xff]   ;;  %v1250_v7 = vld [vmem:[%s1625_s1 + $0x8] sm:$0xff]   ;;  %v51_v11 = vld [vmem:[%s1627_s3 + $0x38] sm:$0xff] }
   0x4   :  { %1163 = vmatpush3.bf16.msra.mxu0 %v1248_v3  ;;  %1164 = vmatprep.mubr.msk.bf16.mxu0 %vm186_vm0, %v1249_v6  ;;  %v49_v9 = vld [vmem:[%s1627_s3 + $0x28] sm:$0xff]  ;;  %v48_v10 = vld [vmem:[%s1627_s3 + $0x20] sm:$0xff]  ;;  %v50_v12 = vld [vmem:[%s1627_s3 + $0x30] sm:$0xff] }
   0x5   :  { %v1252_v13 = vld [vmem:[%s1625_s1 + $0x18] sm:$0xff]   ;;  %v1253_v14 = vld [vmem:[%s1625_s1 + $0x20] sm:$0xff]   ;;  %v53_v15 = vld [vmem:[%s1627_s3 + $0x48] sm:$0xff] }
   0x6   :  { %77 = vperm.xlu1 %1247, %v47_v4   ;;  %67 = vperm.xlu0 %1246, %v45_v5   ;;  %v52_v16 = vld [vmem:[%s1627_s3 + $0x40] sm:$0xff]  ;;  %v55_v17 = vld [vmem:[%s1627_s3 + $0x58] sm:$0xff]  ;;  %v54_v18 = vld [vmem:[%s1627_s3 + $0x50] sm:$0xff] }
   0x7   :  { %1165 = vmatmul.mubr.msk.bf16.vlgmr.msra.gmra.mrb[0].mxu0 %vm186_vm0, %v1250_v7  ;;  %v1254_v19 = vld [vmem:[%s1625_s1 + $0x28] sm:$0xff]   ;;  %v1255_v20 = vld [vmem:[%s1625_s1 + $0x30] sm:$0xff]   ;;  %v56_v22 = vld [vmem:[%s1627_s3 + $0x60] sm:$0xff] }
   0x8   :  { %1168 = vmatprep.mubr.msk.bf16.mxu0 %vm186_vm0, %v1251_v8  ;;  %v57_v21 = vld [vmem:[%s1627_s3 + $0x68] sm:$0xff]  ;;  %v59_v23 = vld [vmem:[%s1627_s3 + $0x78] sm:$0xff]  ;;  %v58_v24 = vld [vmem:[%s1627_s3 + $0x70] sm:$0xff] }
   0x9   :  { %v1256_v25 = vld [vmem:[%s1625_s1 + $0x38] sm:$0xff]   ;;  %v1058_v26 = vld [vmem:[%s1627_s3 + $0x88] sm:$0xff]  ;;  %v1057_v27 = vld [vmem:[%s1627_s3 + $0x80] sm:$0xff] }
   0xa   :  { %87 = vperm.xlu1 %1247, %v49_v9   ;;  %82 = vperm.xlu0 %1246, %v48_v10   ;;  %v1060_v28 = vld [vmem:[%s1627_s3 + $0x98] sm:$0xff]  ;;  %v1059_v29 = vld [vmem:[%s1627_s3 + $0x90] sm:$0xff]  ;;  %v1062_v30 = vld [vmem:[%s1627_s3 + $0xa8] sm:$0xff] }
   0xb   :  { %v1061_v31 = vld [vmem:[%s1627_s3 + $0xa0] sm:$0xff] }
   0xe   :  { %97 = vperm.xlu1 %1247, %v51_v11   ;;  %92 = vperm.xlu0 %1246, %v50_v12  }
   0xf   :  { %1169 = vmatmul.mubr.msk.bf16.gmra.mrb[4].mxu0 %vm186_vm0, %v1252_v13 }
  0x10   :  { %1172 = vmatprep.mubr.msk.bf16.mxu0 %vm186_vm0, %v1253_v14 }
  0x12   :  { %107 = vperm.xlu1 %1247, %v53_v15   ;;  %102 = vperm.xlu0 %1246, %v52_v16  }
  0x16   :  { %117 = vperm.xlu1 %1247, %v55_v17   ;;  %112 = vperm.xlu0 %1246, %v54_v18  }
  0x17   :  { %1173 = vmatmul.mubr.msk.bf16.gmra.mrb[8].mxu0 %vm186_vm0, %v1254_v19 }
  0x18   :  { %1176 = vmatprep.mubr.msk.bf16.mxu0 %vm186_vm0, %v1255_v20 }
  0x1a   :  { %127 = vperm.xlu1 %1247, %v57_v21   ;;  %122 = vperm.xlu0 %1246, %v56_v22  }
  0x1e   :  { %137 = vperm.xlu1 %1247, %v59_v23   ;;  %132 = vperm.xlu0 %1246, %v58_v24  }
  0x1f   :  { %1177 = vmatmul.mubr.msk.bf16.gmra.mrb[12].mxu0 %vm186_vm0, %v1256_v25 }
  0x22   :  { %372 = vperm.xlu1 %1247, %v1058_v26   ;;  %367 = vperm.xlu0 %1246, %v1057_v27  }
  0x26   :  { %382 = vperm.xlu1 %1247, %v1060_v28   ;;  %377 = vperm.xlu0 %1246, %v1059_v29  }
  0x27   :  { %12 = vsyncpa [#allocation4], 0  ;;  %v1064_v32 = vld [vmem:[%s1627_s3 + $0xb8] sm:$0xff]  ;;  %v1063_v33 = vld [vmem:[%s1627_s3 + $0xb0] sm:$0xff]  ;;  %s1298_s16 = smov [#allocation3]  }
  0x28   :  { %v1066_v34 = vld [vmem:[%s1627_s3 + $0xc8] sm:$0xff]  ;;  %v1065_v35 = vld [vmem:[%s1627_s3 + $0xc0] sm:$0xff]  ;;  %v1068_v36 = vld [vmem:[%s1627_s3 + $0xd8] sm:$0xff]  ;;  %s1032_s17 = sshll.u32 %s1298_s16, 4  ;;  %s1033_s17 = int_to_ptr.vmem [resolvable:$true] %s1032_s17 }
  0x29   :  { %v1067_v37 = vld [vmem:[%s1627_s3 + $0xd0] sm:$0xff]  ;;  %v1070_v38 = vld [vmem:[%s1627_s3 + $0xe8] sm:$0xff]  ;;  %v1069_v39 = vld [vmem:[%s1627_s3 + $0xe0] sm:$0xff]  ;;  %s1273_s18 = scalar_lea.vmem %s1033_s17, 16  ;;  %s1277_s19 = scalar_lea.vmem %s1033_s17, 32 }
  0x2a   :  { %392 = vperm.xlu1 %1247, %v1062_v30   ;;  %387 = vperm.xlu0 %1246, %v1061_v31   ;;  %v1072_v40 = vld [vmem:[%s1627_s3 + $0xf8] sm:$0xff]  ;;  %v1071_v41 = vld [vmem:[%s1627_s3 + $0xf0] sm:$0xff]  ;;  %v1098_v42 = vld [vmem:[%s1627_s3 + $0x108] sm:$0xff]  ;;  %p1274_p0 = scmp.ne.s32.totalorder %s1033_s17, %s1273_s18  ;;  %p1278_p1 = scmp.lt.s32.totalorder %s1033_s17, %s1033_s17 }
  0x2b   :  { %v1097_v43 = vld [vmem:[%s1627_s3 + $0x100] sm:$0xff]  ;;  %v1100_v44 = vld [vmem:[%s1627_s3 + $0x118] sm:$0xff]  ;;  %v1099_v45 = vld [vmem:[%s1627_s3 + $0x110] sm:$0xff]  ;;  %p1279_p2 = scmp.lt.s32.totalorder %s1277_s19, %s1273_s18 }
  0x2c   :  { %v890_v46 = vld [vmem:[%s1628_s4 + $0x8] sm:$0xff]  ;;  %v889_v47 = vld [vmem:[%s1628_s4] sm:$0xff]  ;;  %v891_v48 = vld [vmem:[%s1628_s4 + $0x10] sm:$0xff] }
  0x2d   :  { %v1101_v49 = vld [vmem:[%s1627_s3 + $0x120] sm:$0xff]  ;;  %v892_v50 = vld [vmem:[%s1628_s4 + $0x18] sm:$0xff]  ;;  %v1102_v51 = vld [vmem:[%s1627_s3 + $0x128] sm:$0xff]  ;;  %p1280_p3 = por %p1279_p2, %p1278_p1 }
  0x2e   :  { %402 = vperm.xlu1 %1247, %v1064_v32   ;;  %397 = vperm.xlu0 %1246, %v1063_v33   ;;  %v893_v52 = vld [vmem:[%s1628_s4 + $0x20] sm:$0xff]  ;;  %v1103_v53 = vld [vmem:[%s1627_s3 + $0x130] sm:$0xff]  ;;  %v894_v54 = vld [vmem:[%s1628_s4 + $0x28] sm:$0xff] }
  0x2f   :  { %v1104_v55 = vld [vmem:[%s1627_s3 + $0x138] sm:$0xff]  ;;  %v895_v56 = vld [vmem:[%s1628_s4 + $0x30] sm:$0xff]  ;;  %v1105_v57 = vld [vmem:[%s1627_s3 + $0x140] sm:$0xff]  ;;  %p1281_p4 = pnand %p1280_p3, %p1274_p0 }
  0x30   :  { %v896_v58 = vld [vmem:[%s1628_s4 + $0x38] sm:$0xff]  ;;  %v1106_v59 = vld [vmem:[%s1627_s3 + $0x148] sm:$0xff]  ;;  %v897_v60 = vld [vmem:[%s1628_s4 + $0x40] sm:$0xff] }
  0x31   :  { %v1107_v61 = vld [vmem:[%s1627_s3 + $0x150] sm:$0xff]  ;;  %v898_v62 = vld [vmem:[%s1628_s4 + $0x48] sm:$0xff]  ;;  %v1108_v63 = vld [vmem:[%s1627_s3 + $0x158] sm:$0xff] }
  0x32   :  { %412 = vperm.xlu1 %1247, %v1066_v34   ;;  %407 = vperm.xlu0 %1246, %v1065_v35   ;;  %v899_v0 = vld [vmem:[%s1628_s4 + $0x50] sm:$0xff]  ;;  %v1109_v1 = vld [vmem:[%s1627_s3 + $0x160] sm:$0xff]  ;;  %v900_v2 = vld [vmem:[%s1628_s4 + $0x58] sm:$0xff] }
  0x33   :  { %v1110_v3 = vld [vmem:[%s1627_s3 + $0x168] sm:$0xff]  ;;  %v901_v4 = vld [vmem:[%s1628_s4 + $0x60] sm:$0xff]  ;;  %v1111_v5 = vld [vmem:[%s1627_s3 + $0x170] sm:$0xff] }
  0x34   :  { %v902_v6 = vld [vmem:[%s1628_s4 + $0x68] sm:$0xff]  ;;  %v1112_v7 = vld [vmem:[%s1627_s3 + $0x178] sm:$0xff]  ;;  %v903_v9 = vld [vmem:[%s1628_s4 + $0x70] sm:$0xff] }
  0x35   :  { %v904_v8 = vld [vmem:[%s1628_s4 + $0x78] sm:$0xff]  ;;  %v1257_v10 = vld [vmem:[%s1626_s2] sm:$0xff]  }
  0x36   :  { %422 = vperm.xlu1 %1247, %v1068_v36   ;;  %417 = vperm.xlu0 %1246, %v1067_v37  }
  0x37   :  { %1196 = vmatprep.mubr.bf16.mxu1 %v1257_v10 }
  0x3a   :  { %432 = vperm.xlu1 %1247, %v1070_v38   ;;  %427 = vperm.xlu0 %1246, %v1069_v39  }
  0x3e   :  { %442 = vperm.xlu1 %1247, %v1072_v40   ;;  %437 = vperm.xlu0 %1246, %v1071_v41  }
  0x42   :  { %655 = vperm.xlu1 %1247, %v1098_v42   ;;  %650 = vperm.xlu0 %1246, %v1097_v43  }
  0x46   :  { %665 = vperm.xlu1 %1247, %v1100_v44   ;;  %660 = vperm.xlu0 %1246, %v1099_v45  }
  0x4a   :  { %912 = vperm.xlu1 %1247, %v890_v46   ;;  %907 = vperm.xlu0 %1246, %v889_v47  }
  0x4e   :  { %917 = vperm.xlu1 %1247, %v891_v48   ;;  %670 = vperm.xlu0 %1246, %v1101_v49  }
  0x52   :  { %922 = vperm.xlu1 %1247, %v892_v50   ;;  %675 = vperm.xlu0 %1246, %v1102_v51  }
  0x56   :  { %927 = vperm.xlu1 %1247, %v893_v52   ;;  %680 = vperm.xlu0 %1246, %v1103_v53  }
  0x5a   :  { %932 = vperm.xlu1 %1247, %v894_v54   ;;  %685 = vperm.xlu0 %1246, %v1104_v55  }
  0x5e   :  { %937 = vperm.xlu1 %1247, %v895_v56   ;;  %690 = vperm.xlu0 %1246, %v1105_v57  }
  0x62   :  { %942 = vperm.xlu1 %1247, %v896_v58   ;;  %695 = vperm.xlu0 %1246, %v1106_v59  }
  0x66   :  { %947 = vperm.xlu1 %1247, %v897_v60   ;;  %700 = vperm.xlu0 %1246, %v1107_v61  }
  0x6a   :  { %952 = vperm.xlu1 %1247, %v898_v62   ;;  %705 = vperm.xlu0 %1246, %v1108_v63  }
  0x6e   :  { %957 = vperm.xlu1 %1247, %v899_v0   ;;  %710 = vperm.xlu0 %1246, %v1109_v1  }
  0x72   :  { %962 = vperm.xlu1 %1247, %v900_v2   ;;  %715 = vperm.xlu0 %1246, %v1110_v3  }
  0x76   :  { %967 = vperm.xlu1 %1247, %v901_v4   ;;  %720 = vperm.xlu0 %1246, %v1111_v5  }
  0x7a   :  { %972 = vperm.xlu1 %1247, %v902_v6   ;;  %725 = vperm.xlu0 %1246, %v1112_v7  }
  0x7e   :  { %982 = vperm.xlu1 %1247, %v904_v8   ;;  %977 = vperm.xlu0 %1246, %v903_v9  }
  0x81   :  { %v63_v11 = vpop.permute.xlu0 %62  ;;  %v73_v12 = vpop.permute.xlu1 %72 }
  0x85   :  { %v68_v13 = vpop.permute.xlu0 %67  ;;  %v78_v14 = vpop.permute.xlu1 %77 }
  0x89   :  { %v83_v15 = vpop.permute.xlu0 %82  ;;  %v88_v16 = vpop.permute.xlu1 %87 }
  0x8d   :  { %v93_v17 = vpop.permute.xlu0 %92  ;;  %v98_v21 = vpop.permute.xlu1 %97 }
  0x91   :  { %v103_v29 = vpop.permute.xlu0 %102  ;;  %v108_v33 = vpop.permute.xlu1 %107 }
  0x95   :  { %v113_v41 = vpop.permute.xlu0 %112  ;;  %v118_v46 = vpop.permute.xlu1 %117 }
  0x99   :  { %v123_v54 = vpop.permute.xlu0 %122  ;;  %v128_v58 = vpop.permute.xlu1 %127 }
  0x9d   :  { %v133_v2 = vpop.permute.xlu0 %132  ;;  %v138_v7 = vpop.permute.xlu1 %137 }
  0xda   :  { %v1166_v18 = vpop.f32.mrb[0].mxu0 }
  0xdb   :  { %v254_v19 = vadd.f32 %v1166_v18, %v73_v12  ;;  %v245_v20 = vpop.f32.mrb[1].mxu0 }
  0xdc   :  { %v1167_v22 = vpop.f32.mrb[2].mxu0  ;;  %v246_v23 = vadd.f32 %v245_v20, %v63_v11  ;;  %v1259_v20 = vld [vmem:[%s1626_s2 + $0x10] sm:$0xff]  }
  0xdd   :  { %v257_v24 = vadd.f32 %v1167_v22, %v78_v14  ;;  %v248_v25 = vpop.f32.mrb[3].mxu0  ;;  %v310_v26 = vmax.f32 %v254_v19, 0.0  ;;  %v1258_v19 = vld [vmem:[%s1626_s2 + $0x8] sm:$0xff]   ;;  %v1261_v22 = vld [vmem:[%s1626_s2 + $0x20] sm:$0xff]  }
  0xde   :  { %v249_v28 = vadd.f32 %v248_v25, %v68_v13  ;;  %v308_v30 = vmax.f32 %v246_v23, 0.0  ;;  %v1262_v23 = vld [vmem:[%s1626_s2 + $0x28] sm:$0xff]   ;;  %v1264_v25 = vld [vmem:[%s1626_s2 + $0x38] sm:$0xff]  }
  0xdf   :  { %v311_v27 = vmax.f32 %v257_v24, 0.0  ;;  %v1263_v24 = vld [vmem:[%s1626_s2 + $0x30] sm:$0xff]  }
  0xe0   :  { %v309_v32 = vmax.f32 %v249_v28, 0.0  ;;  %v373_v28 = vpop.permute.xlu1 %372 }
  0xe1   :  { %v341_v31 = vpack.c.bf16 %v311_v27, %v310_v26  ;;  %v1265_v26 = vld [vmem:[%s1626_s2 + $0x40] sm:$0xff]   ;;  %v368_v27 = vpop.permute.xlu0 %367 }
  0xe2   :  { %v1170_v34 = vpop.f32.mrb[4].mxu0  ;;  %v340_v37 = vpack.c.bf16 %v309_v32, %v308_v30  ;;  %1228 = vmatprep.mubr.bf16.mxu0 %v1265_v26 }
  0xe3   :  { %v270_v35 = vadd.f32 %v1170_v34, %v93_v17  ;;  %v261_v36 = vpop.f32.mrb[5].mxu0 }
  0xe4   :  { %v1171_v38 = vpop.f32.mrb[6].mxu0  ;;  %v262_v39 = vadd.f32 %v261_v36, %v83_v15  ;;  %1180 = vmatprep.subr.bf16.mxu1 %v340_v37  ;;  %v383_v30 = vpop.permute.xlu1 %382 }
  0xe5   :  { %v273_v40 = vadd.f32 %v1171_v38, %v98_v21  ;;  %v264_v42 = vpop.f32.mrb[7].mxu0  ;;  %1181 = vmatpush3.bf16.msra.mxu1 %v340_v37  ;;  %v314_v43 = vmax.f32 %v270_v35, 0.0  ;;  %v1260_v21 = vld [vmem:[%s1626_s2 + $0x18] sm:$0xff]  }
  0xe6   :  { %v265_v45 = vadd.f32 %v264_v42, %v88_v16  ;;  %1182 = vmatprep.subr.bf16.mxu1 %v341_v31  ;;  %v312_v47 = vmax.f32 %v262_v39, 0.0 }
  0xe7   :  { %v315_v44 = vmax.f32 %v273_v40, 0.0 }
  0xe8   :  { %v313_v49 = vmax.f32 %v265_v45, 0.0  ;;  %v393_v32 = vpop.permute.xlu1 %392 }
  0xe9   :  { %v343_v48 = vpack.c.bf16 %v315_v44, %v314_v43  ;;  %1183 = vmatpush3.bf16.msra.mxu1 %v341_v31 }
  0xea   :  { %v1174_v50 = vpop.f32.mrb[8].mxu0  ;;  %v342_v51 = vpack.c.bf16 %v313_v49, %v312_v47 }
  0xeb   :  { %v286_v52 = vadd.f32 %v1174_v50, %v113_v41  ;;  %v277_v53 = vpop.f32.mrb[9].mxu0 }
  0xec   :  { %v1175_v55 = vpop.f32.mrb[10].mxu0  ;;  %v278_v56 = vadd.f32 %v277_v53, %v103_v29  ;;  %1184 = vmatprep.subr.bf16.mxu1 %v342_v51  ;;  %v378_v29 = vpop.permute.xlu0 %377 }
  0xed   :  { %v289_v57 = vadd.f32 %v1175_v55, %v118_v46  ;;  %v280_v59 = vpop.f32.mrb[11].mxu0  ;;  %1185 = vmatpush3.bf16.msra.mxu1 %v342_v51  ;;  %v318_v60 = vmax.f32 %v286_v52, 0.0  ;;  %v403_v37 = vpop.permute.xlu1 %402 }
  0xee   :  { %v281_v62 = vadd.f32 %v280_v59, %v108_v33  ;;  %1186 = vmatprep.subr.bf16.mxu1 %v343_v48  ;;  %v316_v63 = vmax.f32 %v278_v56, 0.0 }
  0xef   :  { %v319_v61 = vmax.f32 %v289_v57, 0.0 }
  0xf0   :  { %v317_v1 = vmax.f32 %v281_v62, 0.0  ;;  %v388_v31 = vpop.permute.xlu0 %387 }
  0xf1   :  { %v345_v0 = vpack.c.bf16 %v319_v61, %v318_v60  ;;  %1187 = vmatpush3.bf16.msra.mxu1 %v343_v48  ;;  %v413_v49 = vpop.permute.xlu1 %412 }
  0xf2   :  { %v1178_v3 = vpop.f32.mrb[12].mxu0  ;;  %v344_v4 = vpack.c.bf16 %v317_v1, %v316_v63 }
  0xf3   :  { %v302_v5 = vadd.f32 %v1178_v3, %v133_v2  ;;  %v293_v6 = vpop.f32.mrb[13].mxu0 }
  0xf4   :  { %v1179_v8 = vpop.f32.mrb[14].mxu0  ;;  %v294_v9 = vadd.f32 %v293_v6, %v123_v54  ;;  %1188 = vmatprep.subr.bf16.mxu1 %v344_v4  ;;  %v398_v33 = vpop.permute.xlu0 %397 }
  0xf5   :  { %v305_v10 = vadd.f32 %v1179_v8, %v138_v7  ;;  %v296_v11 = vpop.f32.mrb[15].mxu0  ;;  %1189 = vmatpush3.bf16.msra.mxu1 %v344_v4  ;;  %v322_v12 = vmax.f32 %v302_v5, 0.0  ;;  %v423_v62 = vpop.permute.xlu1 %422 }
  0xf6   :  { %v297_v14 = vadd.f32 %v296_v11, %v128_v58  ;;  %1190 = vmatprep.subr.bf16.mxu1 %v345_v0  ;;  %v320_v15 = vmax.f32 %v294_v9, 0.0 }
  0xf7   :  { %v323_v13 = vmax.f32 %v305_v10, 0.0 }
  0xf8   :  { %v321_v17 = vmax.f32 %v297_v14, 0.0  ;;  %v408_v45 = vpop.permute.xlu0 %407 }
  0xf9   :  { %v347_v16 = vpack.c.bf16 %v323_v13, %v322_v12  ;;  %1191 = vmatpush3.bf16.msra.mxu1 %v345_v0  ;;  %v433_v11 = vpop.permute.xlu1 %432 }
  0xfa   :  { %v346_v18 = vpack.c.bf16 %v321_v17, %v320_v15 }
  0xfc   :  { %1192 = vmatprep.subr.bf16.mxu1 %v346_v18  ;;  %v418_v58 = vpop.permute.xlu0 %417 }
  0xfd   :  { %1193 = vmatpush3.bf16.msra.mxu1 %v346_v18 }
  0xfe   :  { %1194 = vmatprep.subr.bf16.mxu1 %v347_v16 }
 0x100   :  { %v428_v6 = vpop.permute.xlu0 %427 }
 0x101   :  { %1195 = vmatpush3.bf16.msra.mxu1 %v347_v16 }
 0x104   :  { %1197 = vmatmul.mubr.bf16.vlgmr.msra.gmra.mrb[0].mxu1 %v1258_v19  ;;  %v438_v18 = vpop.permute.xlu0 %437 }
 0x105   :  { %1200 = vmatprep.mubr.bf16.mxu1 %v1259_v20 }
 0x10c   :  { %1201 = vmatmul.mubr.bf16.gmra.mrb[4].mxu1 %v1260_v21 }
 0x10d   :  { %1204 = vmatprep.mubr.bf16.mxu1 %v1261_v22 }
 0x114   :  { %1205 = vmatmul.mubr.bf16.gmra.mrb[8].mxu1 %v1262_v23  ;;  %v443_v23 = vpop.permute.xlu1 %442 }
 0x115   :  { %1208 = vmatprep.mubr.bf16.mxu1 %v1263_v24 }
 0x11c   :  { %1209 = vmatmul.mubr.bf16.gmra.mrb[12].mxu1 %v1264_v25 }
 0x1d7   :  { %v1198_v34 = vpop.f32.mrb[0].mxu1 }
 0x1d8   :  { %v536_v35 = vadd.f32 %v1198_v34, %v378_v29  ;;  %v527_v36 = vpop.f32.mrb[1].mxu1 }
 0x1d9   :  { %v528_v38 = vadd.f32 %v527_v36, %v368_v27  ;;  %v1199_v39 = vpop.f32.mrb[2].mxu1  ;;  %v1267_v36 = vld [vmem:[%s1626_s2 + $0x50] sm:$0xff]  }
 0x1da   :  { %v539_v40 = vadd.f32 %v1199_v39, %v383_v30  ;;  %v530_v41 = vpop.f32.mrb[3].mxu1  ;;  %v592_v43 = vmax.f32 %v536_v35, 0.0  ;;  %v1266_v35 = vld [vmem:[%s1626_s2 + $0x48] sm:$0xff]  }
 0x1db   :  { %v531_v42 = vadd.f32 %v530_v41, %v373_v28  ;;  %v590_v46 = vmax.f32 %v528_v38, 0.0  ;;  %v1269_v38 = vld [vmem:[%s1626_s2 + $0x60] sm:$0xff]   ;;  %v1270_v39 = vld [vmem:[%s1626_s2 + $0x68] sm:$0xff]   ;;  %v1272_v41 = vld [vmem:[%s1626_s2 + $0x78] sm:$0xff]  }
 0x1dc   :  { %v593_v44 = vmax.f32 %v539_v40, 0.0  ;;  %v1271_v40 = vld [vmem:[%s1626_s2 + $0x70] sm:$0xff]  }
 0x1dd   :  { %v591_v47 = vmax.f32 %v531_v42, 0.0  ;;  %v651_v42 = vpop.permute.xlu0 %650 }
 0x1de   :  { %v624_v48 = vpack.c.bf16 %v593_v44, %v592_v43  ;;  %v656_v43 = vpop.permute.xlu1 %655 }
 0x1df   :  { %v623_v50 = vpack.c.bf16 %v591_v47, %v590_v46  ;;  %v1202_v51 = vpop.f32.mrb[4].mxu1 }
 0x1e0   :  { %v552_v52 = vadd.f32 %v1202_v51, %v398_v33  ;;  %v543_v53 = vpop.f32.mrb[5].mxu1 }
 0x1e1   :  { %v544_v54 = vadd.f32 %v543_v53, %v388_v31  ;;  %v1203_v55 = vpop.f32.mrb[6].mxu1  ;;  %1212 = vmatprep.subr.bf16.mxu0 %v623_v50  ;;  %v661_v44 = vpop.permute.xlu0 %660 }
 0x1e2   :  { %v555_v56 = vadd.f32 %v1203_v55, %v403_v37  ;;  %v546_v57 = vpop.f32.mrb[7].mxu1  ;;  %1213 = vmatpush3.bf16.msra.mxu0 %v623_v50  ;;  %v596_v60 = vmax.f32 %v552_v52, 0.0  ;;  %v1268_v37 = vld [vmem:[%s1626_s2 + $0x58] sm:$0xff]  }
 0x1e3   :  { %v547_v59 = vadd.f32 %v546_v57, %v393_v32  ;;  %1214 = vmatprep.subr.bf16.mxu0 %v624_v48  ;;  %v594_v63 = vmax.f32 %v544_v54, 0.0 }
 0x1e4   :  { %v597_v61 = vmax.f32 %v555_v56, 0.0 }
 0x1e5   :  { %v595_v0 = vmax.f32 %v547_v59, 0.0  ;;  %v908_v46 = vpop.permute.xlu0 %907 }
 0x1e6   :  { %v626_v1 = vpack.c.bf16 %v597_v61, %v596_v60  ;;  %1215 = vmatpush3.bf16.msra.mxu0 %v624_v48 }
 0x1e7   :  { %v625_v2 = vpack.c.bf16 %v595_v0, %v594_v63  ;;  %v1206_v3 = vpop.f32.mrb[8].mxu1 }
 0x1e8   :  { %v568_v4 = vadd.f32 %v1206_v3, %v418_v58  ;;  %v559_v5 = vpop.f32.mrb[9].mxu1 }
 0x1e9   :  { %v560_v7 = vadd.f32 %v559_v5, %v408_v45  ;;  %v1207_v8 = vpop.f32.mrb[10].mxu1  ;;  %1216 = vmatprep.subr.bf16.mxu0 %v625_v2  ;;  %v666_v45 = vpop.permute.xlu1 %665 }
 0x1ea   :  { %v571_v9 = vadd.f32 %v1207_v8, %v423_v62  ;;  %v562_v10 = vpop.f32.mrb[11].mxu1  ;;  %1217 = vmatpush3.bf16.msra.mxu0 %v625_v2  ;;  %v600_v13 = vmax.f32 %v568_v4, 0.0  ;;  %v671_v48 = vpop.permute.xlu0 %670 }
 0x1eb   :  { %v563_v12 = vadd.f32 %v562_v10, %v413_v49  ;;  %1218 = vmatprep.subr.bf16.mxu0 %v626_v1  ;;  %v598_v15 = vmax.f32 %v560_v7, 0.0 }
 0x1ec   :  { %v601_v14 = vmax.f32 %v571_v9, 0.0 }
 0x1ed   :  { %v599_v16 = vmax.f32 %v563_v12, 0.0  ;;  %v913_v47 = vpop.permute.xlu1 %912 }
 0x1ee   :  { %v628_v17 = vpack.c.bf16 %v601_v14, %v600_v13  ;;  %1219 = vmatpush3.bf16.msra.mxu0 %v626_v1  ;;  %v676_v50 = vpop.permute.xlu0 %675 }
 0x1ef   :  { %v627_v19 = vpack.c.bf16 %v599_v16, %v598_v15  ;;  %v1210_v20 = vpop.f32.mrb[12].mxu1 }
 0x1f0   :  { %v584_v21 = vadd.f32 %v1210_v20, %v438_v18  ;;  %v575_v22 = vpop.f32.mrb[13].mxu1 }
 0x1f1   :  { %v576_v24 = vadd.f32 %v575_v22, %v428_v6  ;;  %v1211_v25 = vpop.f32.mrb[14].mxu1  ;;  %1220 = vmatprep.subr.bf16.mxu0 %v627_v19  ;;  %v918_v49 = vpop.permute.xlu1 %917 }
 0x1f2   :  { %v587_v26 = vadd.f32 %v1211_v25, %v443_v23  ;;  %v578_v27 = vpop.f32.mrb[15].mxu1  ;;  %1221 = vmatpush3.bf16.msra.mxu0 %v627_v19  ;;  %v604_v29 = vmax.f32 %v584_v21, 0.0  ;;  %v681_v52 = vpop.permute.xlu0 %680 }
 0x1f3   :  { %v579_v28 = vadd.f32 %v578_v27, %v433_v11  ;;  %1222 = vmatprep.subr.bf16.mxu0 %v628_v17  ;;  %v602_v31 = vmax.f32 %v576_v24, 0.0 }
 0x1f4   :  { %v605_v30 = vmax.f32 %v587_v26, 0.0 }
 0x1f5   :  { %v603_v32 = vmax.f32 %v579_v28, 0.0  ;;  %v923_v51 = vpop.permute.xlu1 %922 }
 0x1f6   :  { %v630_v33 = vpack.c.bf16 %v605_v30, %v604_v29  ;;  %1223 = vmatpush3.bf16.msra.mxu0 %v628_v17  ;;  %v686_v54 = vpop.permute.xlu0 %685 }
 0x1f7   :  { %v629_v34 = vpack.c.bf16 %v603_v32, %v602_v31 }
 0x1f9   :  { %1224 = vmatprep.subr.bf16.mxu0 %v629_v34  ;;  %v928_v53 = vpop.permute.xlu1 %927 }
 0x1fa   :  { %1225 = vmatpush3.bf16.msra.mxu0 %v629_v34  ;;  %v691_v56 = vpop.permute.xlu0 %690 }
 0x1fb   :  { %1226 = vmatprep.subr.bf16.mxu0 %v630_v33 }
 0x1fd   :  { %v933_v55 = vpop.permute.xlu1 %932 }
 0x1fe   :  { %1227 = vmatpush3.bf16.msra.mxu0 %v630_v33  ;;  %v696_v58 = vpop.permute.xlu0 %695 }
 0x201   :  { %1229 = vmatmul.mubr.bf16.vlgmr.msra.gmra.mrb[16].mxu0 %v1266_v35  ;;  %v938_v57 = vpop.permute.xlu1 %937 }
 0x202   :  { %1232 = vmatprep.mubr.bf16.mxu0 %v1267_v36  ;;  %v701_v60 = vpop.permute.xlu0 %700 }
 0x205   :  { %v943_v59 = vpop.permute.xlu1 %942 }
 0x206   :  { %v706_v3 = vpop.permute.xlu0 %705 }
 0x209   :  { %1233 = vmatmul.mubr.bf16.gmra.mrb[20].mxu0 %v1268_v37  ;;  %v948_v61 = vpop.permute.xlu1 %947 }
 0x20a   :  { %1236 = vmatprep.mubr.bf16.mxu0 %v1269_v38  ;;  %v711_v15 = vpop.permute.xlu0 %710 }
 0x20d   :  { %v953_v8 = vpop.permute.xlu1 %952 }
 0x20e   :  { %v716_v33 = vpop.permute.xlu0 %715 }
 0x211   :  { %1237 = vmatmul.mubr.bf16.gmra.mrb[24].mxu0 %v1270_v39  ;;  %v958_v22 = vpop.permute.xlu1 %957 }
 0x212   :  { %1240 = vmatprep.mubr.bf16.mxu0 %v1271_v40 }
 0x215   :  { %v963_v38 = vpop.permute.xlu1 %962 }
 0x219   :  { %1241 = vmatmul.mubr.bf16.gmra.mrb[28].mxu0 %v1272_v41 }
 0x2d4   :  { %v1230_v62 = vpop.f32.mrb[16].mxu0 }
 0x2d5   :  { %v810_v63 = vpop.f32.mrb[17].mxu0  ;;  %v819_v0 = vadd.f32 %v1230_v62, %v661_v44 }
 0x2d6   :  { %v811_v1 = vadd.f32 %v810_v63, %v651_v42  ;;  %v1231_v2 = vpop.f32.mrb[18].mxu0 }
 0x2d7   :  { %v822_v4 = vadd.f32 %v1231_v2, %v666_v45  ;;  %v813_v5 = vpop.f32.mrb[19].mxu0  ;;  %v875_v9 = vmax.f32 %v819_v0, 0.0 }
 0x2d8   :  { %v873_v6 = vmax.f32 %v811_v1, 0.0  ;;  %v814_v7 = vadd.f32 %v813_v5, %v656_v43 }
 0x2d9   :  { %v876_v11 = vmax.f32 %v822_v4, 0.0  ;;  %v987_v17 = vmul.f32 %v918_v49, %v875_v9 }
 0x2da   :  { %v874_v10 = vmax.f32 %v814_v7, 0.0  ;;  %v985_v12 = vmul.f32 %v908_v46, %v873_v6 }
 0x2db   :  { %v988_v23 = vmul.f32 %v923_v51, %v876_v11  ;;  %v721_v51 = vpop.permute.xlu0 %720 }
 0x2dc   :  { %v986_v13 = vmul.f32 %v913_v47, %v874_v10  ;;  %v1234_v14 = vpop.f32.mrb[20].mxu0 }
 0x2dd   :  { %v826_v16 = vpop.f32.mrb[21].mxu0  ;;  %v835_v19 = vadd.f32 %v1234_v14, %v681_v52 }
 0x2de   :  { %v1001_v18 = vadd.f32 %v986_v13, %v985_v12  ;;  %v827_v20 = vadd.f32 %v826_v16, %v671_v48  ;;  %v1235_v21 = vpop.f32.mrb[22].mxu0 }
 0x2df   :  { %v829_v24 = vpop.f32.mrb[23].mxu0  ;;  %v838_v27 = vadd.f32 %v1235_v21, %v686_v54  ;;  %v879_v29 = vmax.f32 %v835_v19, 0.0 }
 0x2e0   :  { %v1002_v25 = vadd.f32 %v1001_v18, %v987_v17  ;;  %v877_v26 = vmax.f32 %v827_v20, 0.0  ;;  %v830_v28 = vadd.f32 %v829_v24, %v676_v50 }
 0x2e1   :  { %v880_v35 = vmax.f32 %v838_v27, 0.0  ;;  %v991_v40 = vmul.f32 %v938_v57, %v879_v29 }
 0x2e2   :  { %v989_v30 = vmul.f32 %v928_v53, %v877_v26  ;;  %v1003_v31 = vadd.f32 %v1002_v25, %v988_v23  ;;  %v878_v32 = vmax.f32 %v830_v28, 0.0 }
 0x2e3   :  { %v992_v47 = vmul.f32 %v943_v59, %v880_v35  ;;  %v726_v59 = vpop.permute.xlu0 %725 }
 0x2e4   :  { %v1004_v34 = vadd.f32 %v1003_v31, %v989_v30  ;;  %v990_v36 = vmul.f32 %v933_v55, %v878_v32  ;;  %v1238_v37 = vpop.f32.mrb[24].mxu0  ;;  %v968_v55 = vpop.permute.xlu1 %967  ;;  %v1023_v30 = vstv %s1629_s5 }
 0x2e5   :  { %v842_v39 = vpop.f32.mrb[25].mxu0  ;;  %v851_v42 = vadd.f32 %v1238_v37, %v701_v60 }
 0x2e6   :  { %v1005_v41 = vadd.f32 %v1004_v34, %v990_v36  ;;  %v843_v43 = vadd.f32 %v842_v39, %v691_v56  ;;  %v1239_v44 = vpop.f32.mrb[26].mxu0 }
 0x2e7   :  { %v854_v45 = vadd.f32 %v1239_v44, %v706_v3  ;;  %v845_v46 = vpop.f32.mrb[27].mxu0  ;;  %v883_v52 = vmax.f32 %v851_v42, 0.0  ;;  %v978_v19 = vpop.permute.xlu0 %977 }
 0x2e8   :  { %v1006_v48 = vadd.f32 %v1005_v41, %v991_v40  ;;  %v881_v49 = vmax.f32 %v843_v43, 0.0  ;;  %v846_v50 = vadd.f32 %v845_v46, %v696_v58  ;;  %v973_v11 = vpop.permute.xlu1 %972 }
 0x2e9   :  { %v884_v63 = vmax.f32 %v854_v45, 0.0  ;;  %v995_v60 = vmul.f32 %v958_v22, %v883_v52 }
 0x2ea   :  { %v993_v53 = vmul.f32 %v948_v61, %v881_v49  ;;  %v1007_v54 = vadd.f32 %v1006_v48, %v992_v47  ;;  %v882_v62 = vmax.f32 %v846_v50, 0.0 }
 0x2eb   :  { %v996_v6 = vmul.f32 %v963_v38, %v884_v63 }
 0x2ec   :  { %v1008_v0 = vadd.f32 %v1007_v54, %v993_v53  ;;  %v994_v1 = vmul.f32 %v953_v8, %v882_v62  ;;  %v1242_v57 = vpop.f32.mrb[28].mxu0 }
 0x2ed   :  { %v858_v2 = vpop.f32.mrb[29].mxu0  ;;  %v867_v4 = vadd.f32 %v1242_v57, %v721_v51 }
 0x2ee   :  { %v1009_v56 = vadd.f32 %v1008_v0, %v994_v1  ;;  %v859_v3 = vadd.f32 %v858_v2, %v711_v15  ;;  %v1243_v5 = vpop.f32.mrb[30].mxu0  ;;  %v983_v15 = vpop.permute.xlu1 %982 }
 0x2ef   :  { %v861_v7 = vpop.f32.mrb[31].mxu0  ;;  %v870_v10 = vadd.f32 %v1243_v5, %v726_v59  ;;  %v887_v12 = vmax.f32 %v867_v4, 0.0 }
 0x2f0   :  { %v1010_v58 = vadd.f32 %v1009_v56, %v995_v60  ;;  %v885_v9 = vmax.f32 %v859_v3, 0.0  ;;  %v862_v61 = vadd.f32 %v861_v7, %v716_v33 }
 0x2f1   :  { %v888_v17 = vmax.f32 %v870_v10, 0.0  ;;  %v999_v20 = vmul.f32 %v978_v19, %v887_v12 }
 0x2f2   :  { %v997_v13 = vmul.f32 %v968_v55, %v885_v9  ;;  %v1011_v14 = vadd.f32 %v1010_v58, %v996_v6  ;;  %v886_v16 = vmax.f32 %v862_v61, 0.0 }
 0x2f3   :  { %v1000_v22 = vmul.f32 %v983_v15, %v888_v17 }
 0x2f4   :  { %v1012_v8 = vadd.f32 %v1011_v14, %v997_v13  ;;  %v998_v18 = vmul.f32 %v973_v11, %v886_v16 }
 0x2f6   :  { %v1013_v21 = vadd.f32 %v1012_v8, %v998_v18 }
 0x2f8   :  { %v1014_v23 = vadd.f32 %v1013_v21, %v999_v20 }
 0x2fa   :  { %v1015_v24 = vadd.f32 %v1014_v23, %v1000_v22 }
 0x2fc   :  { %v1016_v25 = vrot.slane %v1015_v24, 4 }
 0x2fe   :  { %v1017_v26 = vadd.f32 %v1016_v25, %v1015_v24 }
 0x300   :  { %v1018_v27 = vrot.slane %v1017_v26, 2 }
 0x302   :  { %v1019_v28 = vadd.f32 %v1018_v27, %v1017_v26 }
 0x304   :  { %v1020_v29 = vrot.slane %v1019_v28, 1 }
 0x306   :  { %v1021_v31 = vadd.f32 %v1020_v29, %v1019_v28 }
 0x308   :  { %v1024_v32 = vadd.f32 %v1023_v30, %v1021_v31 }
 0x30a   :  { %1025 = vst [vmem:[#allocation3] sm:$0x1] %v1024_v32 }
 0x30b   :  { %1284 = shalt.err (!%p1281_p4)
}
 0x30c   :  { %s1285_s22 = scalar_lea.hbm %s1630_s6, 16 }
 0x30d   :  { %p1286_p5 = scmp.ne.s32.totalorder %s1630_s6, %s1285_s22  ;;  %p1289_p6 = scmp.lt.u32.totalorder %s1285_s22, %s1630_s6 }
 0x30f   :  { %p1291_p7 = pnand %p1289_p6, %p1286_p5 }
 0x311   :  { %1294 = shalt.err (!%p1291_p7)
}
 0x312   :  { %1035 = dma.vmem_to_hbm [thread:$0]  %s1033_s17, 16, %s1630_s6, [#allocation4]  }
 0x313   :  { %1295 = dma.done.wait [#allocation4], 16  }
 0x314   :  { %1296 = vsyncadd [#allocation4], 4294967280 }
 0x315   :  { %1039 = vsyncpa [#allocation4], 1 }

</bundles_post_ra>
